<compile_context>
chip_gen: v6e
topology: v6e:2x2x1
jax: 0.10.0
libtpu: 0.0.40
codegen_flags: <defaults>
</compile_context>

<pallas_src>
import functools

import numpy as np
import jax
import jax.numpy as jnp
from jax.experimental import pallas as pl
from jax.experimental.pallas import tpu as pltpu


def _prompt_assemble_kernel(meta_ref, uniq_tok_ref, fix_row_ref, fix_uniq_ref,  # SMEM (prefetched)
                            table_hbm, ctx_ref,                                  # inputs
                            out_ref,                                             # [TC, L, Dp] block
                            scratch, sem, *,                                     # VMEM / DMA sems
                            n_ctx_total, classes_per_block):
    # meta_ref     : SMEM [n_cls_pad, 4] int32  (uniq_count, row0_uniq, fill_uniq, fix_count)
    # uniq_tok_ref : SMEM [n_cls_pad, G] int32  (distinct token ids per class)
    # fix_row_ref  : SMEM [n_cls_pad, G-1] int32 (suffix rows differing from the fill row)
    # fix_uniq_ref : SMEM [n_cls_pad, G-1] int32 (their unique-slot index)
    # table_hbm    : HBM  [V, Dp] f32   (token embedding table, never staged to VMEM)
    # ctx_ref      : VMEM [n_ctx_total, Dp]   ([ctx ; ctxs], shared by all classes)
    # scratch      : VMEM [TC, G, Dp]   (per-class gathered unique embedding rows)
    # sem          : DMA semaphores, one per class slot in the block
    TC = classes_per_block
    L, Dp = out_ref.shape[1], out_ref.shape[2]
    suffix_start = 1 + n_ctx_total
    n_suffix = L - suffix_start
    blk = pl.program_id(0)

    def issue(c):
        # Gather class c's distinct embedding rows into its private scratch rows.
        gc = blk * TC + c
        @pl.loop(0, meta_ref[gc, 0])                      # uniq_count: ~6-7 tiny copies
        def _copy(u):
            pltpu.make_async_copy(
                table_hbm.at[pl.ds(uniq_tok_ref[gc, u], 1)],   # one [1, Dp] table row
                scratch.at[c, pl.ds(u, 1)],
                sem.at[c]).start()

    # Prime class 0, then software-pipeline: issue c+1 / drain c / fill c.
    issue(0)

    # Learned-context rows: single hoisted load + one broadcast store for the block.
    if n_ctx_total > 0:
        ctx = ctx_ref[...].astype(out_ref.dtype)               # [n_ctx_total, Dp]
        out_ref[:, pl.ds(1, n_ctx_total), :] = jnp.broadcast_to(
            ctx[None], (TC, n_ctx_total, Dp))

    @pl.loop(0, TC)
    def _per_class(c):
        gc = blk * TC + c

        @pl.when(c + 1 < TC)
        def _issue_next():
            issue(c + 1)                                       # keep ~2 classes in flight

        # Drain class c's copies: one wait per issued copy.  All copies are the
        # identical [1, Dp] row shape, so an equivalently-shaped dummy descriptor
        # on sem[c] accounts for exactly one of them.
        @pl.loop(0, meta_ref[gc, 0])
        def _wait(u):
            pltpu.make_async_copy(table_hbm.at[pl.ds(0, 1)],
                                  scratch.at[c, pl.ds(0, 1)],
                                  sem.at[c]).wait()

        # Row 0: SOT / prefix embedding.
        out_ref[c, pl.ds(0, 1), :] = (
            scratch[c, pl.ds(meta_ref[gc, 1], 1), :].astype(out_ref.dtype))

        # Bulk-fill every suffix row with the dominant (in practice: pad) token row.
        fill = scratch[c, pl.ds(meta_ref[gc, 2], 1), :].astype(out_ref.dtype)   # [1, Dp]
        out_ref[c, pl.ds(suffix_start, n_suffix), :] = jnp.broadcast_to(
            fill, (n_suffix, Dp))

        # Fix up the few suffix rows (classname / '.' / EOT) whose token differs.
        @pl.loop(0, meta_ref[gc, 3])
        def _fix(f):
            out_ref[c, pl.ds(fix_row_ref[gc, f], 1), :] = (
                scratch[c, pl.ds(fix_uniq_ref[gc, f], 1), :].astype(out_ref.dtype))


def prompt_learner_forward(tokenized, embed_table, ctx, ctx0, ctx1, mode, *,
                           classes_per_block=16, out_dtype=jnp.float32):
    """Returns (prompts [n_cls, L, D], tokenized_prompts [n_cls, L])."""
    n_cls, L = tokenized.shape
    V, D = embed_table.shape

    # `mode` is a static Python int (separate trace per mode, mirroring the
    # PyTorch `if mode == 0/1` selection of module parameters).
    ctxs = ctx0 if mode == 0 else ctx1
    ctx_cat = jnp.concatenate([ctx, ctxs], axis=0)                 # [n_total, D]
    n_total = ctx_cat.shape[0]
    suffix_start = 1 + n_total

    # Lane-dense layout (Dp % 128 == 0).  Real CLIP has D=512 -> no-op.  If D is
    # not a multiple of 128, pad & cache the table ONCE outside the jitted step in
    # real use; a per-call pad copies the whole table HBM->HBM.
    Dp = ((D + 127) // 128) * 128
    pad = Dp - D
    table_p = jnp.pad(embed_table, ((0, 0), (0, pad))) if pad else embed_table
    ctx_p = jnp.pad(ctx_cat, ((0, 0), (0, pad))) if pad else ctx_cat

    # ---------- wrapper-side dedup of the gather rows (tiny int ops) ----------
    tok = tokenized.astype(jnp.int32)
    gather_rows = np.concatenate([[0], np.arange(suffix_start, L)]).astype(np.int32)
    G = int(gather_rows.size)                           # embedded rows per class
    g_toks = tok[:, gather_rows]                        # [n_cls, G]
    iota = jnp.arange(G, dtype=jnp.int32)
    eq = g_toks[:, :, None] == g_toks[:, None, :]       # [n_cls, G, G]
    first = jnp.argmax(eq, axis=-1).astype(jnp.int32)   # first occurrence of each token
    is_first = first == iota[None, :]
    compact = jnp.cumsum(is_first, axis=-1).astype(jnp.int32) - 1
    row_uniq = jnp.take_along_axis(compact, first, axis=-1)        # gather-row -> unique slot
    uniq_count = jnp.sum(is_first, axis=-1).astype(jnp.int32)
    order = jnp.argsort(jnp.where(is_first, iota, G + iota), axis=-1)
    uniq_tokens = jnp.take_along_axis(g_toks, order, axis=-1).astype(jnp.int32)
    uniq_tokens = jnp.clip(uniq_tokens, 0, V - 1)       # guard: no OOB HBM DMA possible

    fill_uniq = row_uniq[:, -1]                         # slot of the last row (pad token in practice)
    suf_uniq = row_uniq[:, 1:]                          # suffix gather rows
    differs = suf_uniq != fill_uniq[:, None]
    fix_count = jnp.sum(differs, axis=-1).astype(jnp.int32)
    gi = jnp.arange(G - 1, dtype=jnp.int32)
    forder = jnp.argsort(jnp.where(differs, gi, (G - 1) + gi), axis=-1)
    fix_rows = (suffix_start + forder).astype(jnp.int32)
    fix_uniq = jnp.take_along_axis(suf_uniq, forder, axis=-1).astype(jnp.int32)
    meta = jnp.stack([uniq_count, row_uniq[:, 0], fill_uniq, fix_count], axis=1)  # [n_cls, 4]

    # ---------------------------- class-block tiling ----------------------------
    TC = max(1, min(classes_per_block, n_cls))
    n_blocks = pl.cdiv(n_cls, TC)
    n_cls_pad = n_blocks * TC
    cpad = n_cls_pad - n_cls
    if cpad:  # pad only the small SMEM tables; padded classes issue 0 DMAs / 0 fixups
        meta = jnp.pad(meta, ((0, cpad), (0, 0)))
        uniq_tokens = jnp.pad(uniq_tokens, ((0, cpad), (0, 0)))
        fix_rows = jnp.pad(fix_rows, ((0, cpad), (0, 0)))
        fix_uniq = jnp.pad(fix_uniq, ((0, cpad), (0, 0)))

    kernel = functools.partial(_prompt_assemble_kernel,
                               n_ctx_total=n_total, classes_per_block=TC)

    prompts_p = pl.pallas_call(
        kernel,
        out_shape=jax.ShapeDtypeStruct((n_cls, L, Dp), out_dtype),
        grid_spec=pltpu.PrefetchScalarGridSpec(
            num_scalar_prefetch=4,                      # meta / uniq_tokens / fix_rows / fix_uniq
            grid=(n_blocks,),
            in_specs=[
                pl.BlockSpec(memory_space=pl.ANY),      # embedding table stays in HBM
                pl.BlockSpec((n_total, Dp), lambda i, *_: (0, 0)),
            ],
            out_specs=pl.BlockSpec((TC, L, Dp), lambda i, *_: (i, 0, 0)),
            scratch_shapes=[
                pltpu.VMEM((TC, G, Dp), table_p.dtype),
                pltpu.SemaphoreType.DMA((TC,)),
            ],
        ),
        compiler_params=pltpu.CompilerParams(
            dimension_semantics=("parallel",)),         # class blocks independent (v7x: 2 TCs)
    )(meta, uniq_tokens, fix_rows, fix_uniq, table_p, ctx_p)

    prompts = prompts_p[..., :D] if pad else prompts_p
    return prompts, tokenized


def _reference_forward(tokenized, embed_table, ctx, ctx0, ctx1, mode):
    ctxs = ctx0 if mode == 0 else ctx1
    n_cls = tokenized.shape[0]
    n_total = ctx.shape[0] + ctxs.shape[0]
    emb = embed_table[tokenized]                        # [n_cls, L, D]
    prefix = emb[:, :1, :]
    suffix = emb[:, 1 + n_total:, :]
    ctx_b = jnp.broadcast_to(ctx[None], (n_cls,) + ctx.shape)
    ctxs_b = jnp.broadcast_to(ctxs[None], (n_cls,) + ctxs.shape)
    return jnp.concatenate([prefix, ctx_b, ctxs_b, suffix], axis=1)


if __name__ == "__main__":
    # Small, deterministic synthetic setup consistent with the module.
    n_cls = 6                 # len(classnames)
    L = 77                    # CLIP context length
    D = 32                    # ctx_dim (clip_model.ln_final.weight.shape[0])
    V = 64                    # synthetic vocab size
    n_ctx_general = 4
    n_ctx_special = 2
    n_total = n_ctx_general + n_ctx_special
    mode = 1                  # selects ctx1

    key = jax.random.PRNGKey(0)
    k_tab, k_ctx, k_c0, k_c1, k_name = jax.random.split(key, 5)

    # Parameters (nn.init.normal_(std=0.02) equivalents) and token-embedding table.
    embed_table = jax.random.normal(k_tab, (V, D), jnp.float32) * 0.02
    ctx = jax.random.normal(k_ctx, (n_ctx_general, D), jnp.float32) * 0.02
    ctx0 = jax.random.normal(k_c0, (n_ctx_special, D), jnp.float32) * 0.02
    ctx1 = jax.random.normal(k_c1, (n_ctx_special, D), jnp.float32) * 0.02

    # Synthetic CLIP-style tokenization of "X X ... X <classname> ." per class.
    # TODO(synk): the real BPE _Tokenizer has no Pallas/JAX equivalent; token ids are synthesized.
    SOT, EOT, XTOK, DOT, PAD = 1, 2, 3, 4, 0
    name_len = 3
    name_toks = jax.random.randint(k_name, (n_cls, name_len), 5, V, dtype=jnp.int32)
    tokenized = jnp.full((n_cls, L), PAD, jnp.int32)
    tokenized = tokenized.at[:, 0].set(SOT)
    tokenized = tokenized.at[:, 1:1 + n_total].set(XTOK)
    tokenized = tokenized.at[:, 1 + n_total:1 + n_total + name_len].set(name_toks)
    tokenized = tokenized.at[:, 1 + n_total + name_len].set(DOT)
    tokenized = tokenized.at[:, 1 + n_total + name_len + 1].set(EOT)

    prompts, tok_out = prompt_learner_forward(
        tokenized, embed_table, ctx, ctx0, ctx1, mode, classes_per_block=2)
    prompts = jax.block_until_ready(prompts)

    ref = _reference_forward(tokenized, embed_table, ctx, ctx0, ctx1, mode)
    assert prompts.shape == (n_cls, L, D)
    assert tok_out.shape == (n_cls, L)
    assert jnp.allclose(prompts, ref, atol=1e-6), "mismatch vs reference"

    print("KERNEL_OK")
</pallas_src>

<mosaic_0001>
module attributes {stable_mosaic.version = 11 : i64} {
  func.func @_prompt_assemble_kernel(%arg0: i32, %arg1: memref<6x4xi32, #tpu.memory_space<smem>>, %arg2: memref<6x71xi32, #tpu.memory_space<smem>>, %arg3: memref<6x70xi32, #tpu.memory_space<smem>>, %arg4: memref<6x70xi32, #tpu.memory_space<smem>>, %arg5: memref<64x128xf32, #tpu.memory_space<any>>, %arg6: memref<6x128xf32, #tpu.memory_space<vmem>>, %arg7: memref<2x77x128xf32, #tpu.memory_space<vmem>>, %arg8: memref<2x71x128xf32, #tpu.memory_space<vmem>>, %arg9: memref<2x!tpu.dma_semaphore, #tpu.memory_space<semaphore_mem>>) attributes {dimension_semantics = [#tpu.dimension_semantics<parallel>], iteration_bounds = array<i64: 3>, scalar_prefetch = 4 : i64, scratch_operands = 2 : i64, tpu.core_type = #tpu.core_type<tc>, window_params = [{}, {pipeline_mode = #tpu.pipeline_mode<synchronous>, transform_indices = @transform_1, window_bounds = array<i64: 6, 128>}, {transform_indices = @transform_2, window_bounds = array<i64: 2, 77, 128>}]} {
    %c2_i32 = arith.constant 2 : i32
    %0 = arith.muli %arg0, %c2_i32 : i32
    %c0_i32 = arith.constant 0 : i32
    %1 = arith.addi %0, %c0_i32 : i32
    %2 = arith.index_cast %1 : i32 to index
    %c0 = arith.constant 0 : index
    %3 = memref.load %arg1[%2, %c0] : memref<6x4xi32, #tpu.memory_space<smem>>
    %c0_i32_0 = arith.constant 0 : i32
    %4 = arith.subi %3, %c0_i32_0 : i32
    %c1_i32 = arith.constant 1 : i32
    %c1_i32_1 = arith.constant 1 : i32
    %5 = arith.subi %c1_i32, %c1_i32_1 : i32
    %6 = arith.addi %4, %5 : i32
    %c1_i32_2 = arith.constant 1 : i32
    %7 = arith.divsi %6, %c1_i32_2 : i32
    %c1_i32_3 = arith.constant 1 : i32
    %c0_i32_4 = arith.constant 0 : i32
    %c0_i32_5 = arith.constant 0 : i32
    %8 = arith.subi %7, %c0_i32_5 : i32
    %9 = arith.addi %c0_i32_5, %8 : i32
    %c1_i32_6 = arith.constant 1 : i32
    scf.for %arg10 = %c0_i32_5 to %9 step %c1_i32_6  : i32 {
      %16 = arith.muli %arg10, %c1_i32_3 : i32
      %17 = arith.addi %c0_i32_4, %16 : i32
      %18 = arith.index_cast %1 : i32 to index
      %19 = arith.index_cast %17 : i32 to index
      %20 = memref.load %arg2[%18, %19] : memref<6x71xi32, #tpu.memory_space<smem>>
      %c0_i32_15 = arith.constant 0 : i32
      %c0_i32_16 = arith.constant 0 : i32
      %c0_i32_17 = arith.constant 0 : i32
      %21 = tpu.memref_slice %arg5[%20, %c0_i32_17] : memref<64x128xf32, #tpu.memory_space<any>> -> memref<1x128xf32, #tpu.memory_space<any>>
      %c0_i32_18 = arith.constant 0 : i32
      %22 = tpu.memref_slice %arg8[%c0_i32_15, %17, %c0_i32_18] : memref<2x71x128xf32, #tpu.memory_space<vmem>> -> memref<1x1x128xf32, #tpu.memory_space<vmem>>
      %23 = tpu.memref_squeeze %22 : memref<1x1x128xf32, #tpu.memory_space<vmem>> -> memref<1x128xf32, #tpu.memory_space<vmem>>
      %24 = tpu.memref_slice %arg9[%c0_i32_16] : memref<2x!tpu.dma_semaphore, #tpu.memory_space<semaphore_mem>> -> memref<1x!tpu.dma_semaphore, #tpu.memory_space<semaphore_mem>>
      %25 = tpu.memref_squeeze %24 : memref<1x!tpu.dma_semaphore, #tpu.memory_space<semaphore_mem>> -> memref<!tpu.dma_semaphore, #tpu.memory_space<semaphore_mem>>
      tpu.enqueue_dma source(%21 : memref<1x128xf32, #tpu.memory_space<any>>) target(%23 : memref<1x128xf32, #tpu.memory_space<vmem>>) target_semaphore(%25 : memref<!tpu.dma_semaphore, #tpu.memory_space<semaphore_mem>>)
    }
    %c0_7 = arith.constant 0 : index
    %c0_8 = arith.constant 0 : index
    %10 = vector.load %arg6[%c0_7, %c0_8] : memref<6x128xf32, #tpu.memory_space<vmem>>, vector<6x128xf32>
    %11 = vector.shape_cast %10 : vector<6x128xf32> to vector<1x6x128xf32>
    %12 = vector.shape_cast %11 : vector<1x6x128xf32> to vector<1x6x128xf32>
    %13 = vector.broadcast %12 : vector<1x6x128xf32> to vector<2x6x128xf32>
    %c0_9 = arith.constant 0 : index
    %c1 = arith.constant 1 : index
    %c0_10 = arith.constant 0 : index
    %14 = vector.load %arg7[%c0_9, %c1, %c0_10] : memref<2x77x128xf32, #tpu.memory_space<vmem>>, vector<2x6x128xf32>
    tpu.vector_store %arg7[%c0_9, %c1, %c0_10], %13 {strides = array<i32>} : memref<2x77x128xf32, #tpu.memory_space<vmem>>, vector<2x6x128xf32>,
    %c0_i32_11 = arith.constant 0 : i32
    %c2_i32_12 = arith.constant 2 : i32
    %15 = arith.addi %c0_i32_11, %c2_i32_12 : i32
    %c1_i32_13 = arith.constant 1 : i32
    scf.for %arg10 = %c0_i32_11 to %15 step %c1_i32_13  : i32 {
      %c1_i32_15 = arith.constant 1 : i32
      %16 = arith.muli %arg10, %c1_i32_15 : i32
      %c0_i32_16 = arith.constant 0 : i32
      %17 = arith.addi %c0_i32_16, %16 : i32
      %c2_i32_17 = arith.constant 2 : i32
      %18 = arith.muli %arg0, %c2_i32_17 : i32
      %19 = arith.addi %18, %17 : i32
      %c1_i32_18 = arith.constant 1 : i32
      %20 = arith.addi %17, %c1_i32_18 : i32
      %c2_i32_19 = arith.constant 2 : i32
      %21 = arith.cmpi slt, %20, %c2_i32_19 : i32
      %22 = arith.extui %21 : i1 to i32
      %c0_i32_20 = arith.constant 0 : i32
      %23 = arith.cmpi ne, %22, %c0_i32_20 : i32
      scf.if %23 {
        %c1_i32_44 = arith.constant 1 : i32
        %62 = arith.addi %17, %c1_i32_44 : i32
        %c2_i32_45 = arith.constant 2 : i32
        %63 = arith.muli %arg0, %c2_i32_45 : i32
        %64 = arith.addi %63, %62 : i32
        %65 = arith.index_cast %64 : i32 to index
        %c0_46 = arith.constant 0 : index
        %66 = memref.load %arg1[%65, %c0_46] : memref<6x4xi32, #tpu.memory_space<smem>>
        %c0_i32_47 = arith.constant 0 : i32
        %67 = arith.subi %66, %c0_i32_47 : i32
        %c1_i32_48 = arith.constant 1 : i32
        %c1_i32_49 = arith.constant 1 : i32
        %68 = arith.subi %c1_i32_48, %c1_i32_49 : i32
        %69 = arith.addi %67, %68 : i32
        %c1_i32_50 = arith.constant 1 : i32
        %70 = arith.divsi %69, %c1_i32_50 : i32
        %c1_i32_51 = arith.constant 1 : i32
        %c0_i32_52 = arith.constant 0 : i32
        %c0_i32_53 = arith.constant 0 : i32
        %71 = arith.subi %70, %c0_i32_53 : i32
        %72 = arith.addi %c0_i32_53, %71 : i32
        %c1_i32_54 = arith.constant 1 : i32
        scf.for %arg11 = %c0_i32_53 to %72 step %c1_i32_54  : i32 {
          %73 = arith.muli %arg11, %c1_i32_51 : i32
          %74 = arith.addi %c0_i32_52, %73 : i32
          %75 = arith.index_cast %64 : i32 to index
          %76 = arith.index_cast %74 : i32 to index
          %77 = memref.load %arg2[%75, %76] : memref<6x71xi32, #tpu.memory_space<smem>>
          %c0_i32_55 = arith.constant 0 : i32
          %78 = tpu.memref_slice %arg5[%77, %c0_i32_55] : memref<64x128xf32, #tpu.memory_space<any>> -> memref<1x128xf32, #tpu.memory_space<any>>
          %c0_i32_56 = arith.constant 0 : i32
          %79 = tpu.memref_slice %arg8[%62, %74, %c0_i32_56] : memref<2x71x128xf32, #tpu.memory_space<vmem>> -> memref<1x1x128xf32, #tpu.memory_space<vmem>>
          %80 = tpu.memref_squeeze %79 : memref<1x1x128xf32, #tpu.memory_space<vmem>> -> memref<1x128xf32, #tpu.memory_space<vmem>>
          %81 = tpu.memref_slice %arg9[%62] : memref<2x!tpu.dma_semaphore, #tpu.memory_space<semaphore_mem>> -> memref<1x!tpu.dma_semaphore, #tpu.memory_space<semaphore_mem>>
          %82 = tpu.memref_squeeze %81 : memref<1x!tpu.dma_semaphore, #tpu.memory_space<semaphore_mem>> -> memref<!tpu.dma_semaphore, #tpu.memory_space<semaphore_mem>>
          tpu.enqueue_dma source(%78 : memref<1x128xf32, #tpu.memory_space<any>>) target(%80 : memref<1x128xf32, #tpu.memory_space<vmem>>) target_semaphore(%82 : memref<!tpu.dma_semaphore, #tpu.memory_space<semaphore_mem>>)
        }
      } else {
      }
      %24 = arith.index_cast %19 : i32 to index
      %c0_21 = arith.constant 0 : index
      %25 = memref.load %arg1[%24, %c0_21] : memref<6x4xi32, #tpu.memory_space<smem>>
      %c0_i32_22 = arith.constant 0 : i32
      %26 = arith.subi %25, %c0_i32_22 : i32
      %c1_i32_23 = arith.constant 1 : i32
      %c1_i32_24 = arith.constant 1 : i32
      %27 = arith.subi %c1_i32_23, %c1_i32_24 : i32
      %28 = arith.addi %26, %27 : i32
      %c1_i32_25 = arith.constant 1 : i32
      %29 = arith.divsi %28, %c1_i32_25 : i32
      %c1_i32_26 = arith.constant 1 : i32
      %c0_i32_27 = arith.constant 0 : i32
      %c0_i32_28 = arith.constant 0 : i32
      %30 = arith.subi %29, %c0_i32_28 : i32
      %31 = arith.addi %c0_i32_28, %30 : i32
      %c1_i32_29 = arith.constant 1 : i32
      scf.for %arg11 = %c0_i32_28 to %31 step %c1_i32_29  : i32 {
        %62 = arith.muli %arg11, %c1_i32_26 : i32
        %63 = arith.addi %c0_i32_27, %62 : i32
        %c0_i32_44 = arith.constant 0 : i32
        %c0_i32_45 = arith.constant 0 : i32
        %64 = tpu.memref_slice %arg5[%c0_i32_44, %c0_i32_45] : memref<64x128xf32, #tpu.memory_space<any>> -> memref<1x128xf32, #tpu.memory_space<any>>
        %c0_i32_46 = arith.constant 0 : i32
        %c0_i32_47 = arith.constant 0 : i32
        %65 = tpu.memref_slice %arg8[%17, %c0_i32_46, %c0_i32_47] : memref<2x71x128xf32, #tpu.memory_space<vmem>> -> memref<1x1x128xf32, #tpu.memory_space<vmem>>
        %66 = tpu.memref_squeeze %65 : memref<1x1x128xf32, #tpu.memory_space<vmem>> -> memref<1x128xf32, #tpu.memory_space<vmem>>
        %67 = tpu.memref_slice %arg9[%17] : memref<2x!tpu.dma_semaphore, #tpu.memory_space<semaphore_mem>> -> memref<1x!tpu.dma_semaphore, #tpu.memory_space<semaphore_mem>>
        %68 = tpu.memref_squeeze %67 : memref<1x!tpu.dma_semaphore, #tpu.memory_space<semaphore_mem>> -> memref<!tpu.dma_semaphore, #tpu.memory_space<semaphore_mem>>
        tpu.wait_dma2 semaphore(%68 : memref<!tpu.dma_semaphore, #tpu.memory_space<semaphore_mem>>) src(%64 : memref<1x128xf32, #tpu.memory_space<any>>) dst(%66 : memref<1x128xf32, #tpu.memory_space<vmem>>)
      }
      %32 = arith.index_cast %19 : i32 to index
      %c1_30 = arith.constant 1 : index
      %33 = memref.load %arg1[%32, %c1_30] : memref<6x4xi32, #tpu.memory_space<smem>>
      %34 = arith.index_cast %17 : i32 to index
      %35 = arith.index_cast %33 : i32 to index
      %c0_31 = arith.constant 0 : index
      %36 = vector.load %arg8[%34, %35, %c0_31] : memref<2x71x128xf32, #tpu.memory_space<vmem>>, vector<1x1x128xf32>
      %37 = vector.shape_cast %36 : vector<1x1x128xf32> to vector<1x128xf32>
      %38 = arith.index_cast %17 : i32 to index
      %c0_32 = arith.constant 0 : index
      %c0_33 = arith.constant 0 : index
      %39 = vector.load %arg7[%38, %c0_32, %c0_33] : memref<2x77x128xf32, #tpu.memory_space<vmem>>, vector<1x1x128xf32>
      %40 = vector.shape_cast %39 : vector<1x1x128xf32> to vector<1x128xf32>
      %41 = vector.shape_cast %37 : vector<1x128xf32> to vector<1x1x128xf32>
      tpu.vector_store %arg7[%38, %c0_32, %c0_33], %41 {strides = array<i32>} : memref<2x77x128xf32, #tpu.memory_space<vmem>>, vector<1x1x128xf32>,
      %42 = arith.index_cast %19 : i32 to index
      %c2 = arith.constant 2 : index
      %43 = memref.load %arg1[%42, %c2] : memref<6x4xi32, #tpu.memory_space<smem>>
      %44 = arith.index_cast %17 : i32 to index
      %45 = arith.index_cast %43 : i32 to index
      %c0_34 = arith.constant 0 : index
      %46 = vector.load %arg8[%44, %45, %c0_34] : memref<2x71x128xf32, #tpu.memory_space<vmem>>, vector<1x1x128xf32>
      %47 = vector.shape_cast %46 : vector<1x1x128xf32> to vector<1x128xf32>
      %48 = vector.shape_cast %47 : vector<1x128xf32> to vector<1x128xf32>
      %49 = vector.broadcast %48 : vector<1x128xf32> to vector<70x128xf32>
      %50 = arith.index_cast %17 : i32 to index
      %c7 = arith.constant 7 : index
      %c0_35 = arith.constant 0 : index
      %51 = vector.load %arg7[%50, %c7, %c0_35] : memref<2x77x128xf32, #tpu.memory_space<vmem>>, vector<1x70x128xf32>
      %52 = vector.shape_cast %51 : vector<1x70x128xf32> to vector<70x128xf32>
      %53 = vector.shape_cast %49 : vector<70x128xf32> to vector<1x70x128xf32>
      tpu.vector_store %arg7[%50, %c7, %c0_35], %53 {strides = array<i32>} : memref<2x77x128xf32, #tpu.memory_space<vmem>>, vector<1x70x128xf32>,
      %54 = arith.index_cast %19 : i32 to index
      %c3 = arith.constant 3 : index
      %55 = memref.load %arg1[%54, %c3] : memref<6x4xi32, #tpu.memory_space<smem>>
      %c0_i32_36 = arith.constant 0 : i32
      %56 = arith.subi %55, %c0_i32_36 : i32
      %c1_i32_37 = arith.constant 1 : i32
      %c1_i32_38 = arith.constant 1 : i32
      %57 = arith.subi %c1_i32_37, %c1_i32_38 : i32
      %58 = arith.addi %56, %57 : i32
      %c1_i32_39 = arith.constant 1 : i32
      %59 = arith.divsi %58, %c1_i32_39 : i32
      %c1_i32_40 = arith.constant 1 : i32
      %c0_i32_41 = arith.constant 0 : i32
      %c0_i32_42 = arith.constant 0 : i32
      %60 = arith.subi %59, %c0_i32_42 : i32
      %61 = arith.addi %c0_i32_42, %60 : i32
      %c1_i32_43 = arith.constant 1 : i32
      scf.for %arg11 = %c0_i32_42 to %61 step %c1_i32_43  : i32 {
        %62 = arith.muli %arg11, %c1_i32_40 : i32
        %63 = arith.addi %c0_i32_41, %62 : i32
        %64 = arith.index_cast %19 : i32 to index
        %65 = arith.index_cast %63 : i32 to index
        %66 = memref.load %arg4[%64, %65] : memref<6x70xi32, #tpu.memory_space<smem>>
        %67 = arith.index_cast %17 : i32 to index
        %68 = arith.index_cast %66 : i32 to index
        %c0_44 = arith.constant 0 : index
        %69 = vector.load %arg8[%67, %68, %c0_44] : memref<2x71x128xf32, #tpu.memory_space<vmem>>, vector<1x1x128xf32>
        %70 = vector.shape_cast %69 : vector<1x1x128xf32> to vector<1x128xf32>
        %71 = arith.index_cast %19 : i32 to index
        %72 = arith.index_cast %63 : i32 to index
        %73 = memref.load %arg3[%71, %72] : memref<6x70xi32, #tpu.memory_space<smem>>
        %74 = arith.index_cast %17 : i32 to index
        %75 = arith.index_cast %73 : i32 to index
        %c0_45 = arith.constant 0 : index
        %76 = vector.load %arg7[%74, %75, %c0_45] : memref<2x77x128xf32, #tpu.memory_space<vmem>>, vector<1x1x128xf32>
        %77 = vector.shape_cast %76 : vector<1x1x128xf32> to vector<1x128xf32>
        %78 = vector.shape_cast %70 : vector<1x128xf32> to vector<1x1x128xf32>
        tpu.vector_store %arg7[%74, %75, %c0_45], %78 {strides = array<i32>} : memref<2x77x128xf32, #tpu.memory_space<vmem>>, vector<1x1x128xf32>,
      }
    }
    %c2_i32_14 = arith.constant 2 : i32
    return
  }
  func.func @transform_1(%arg0: i32, %arg1: memref<6x4xi32, #tpu.memory_space<smem>>, %arg2: memref<6x71xi32, #tpu.memory_space<smem>>, %arg3: memref<6x70xi32, #tpu.memory_space<smem>>, %arg4: memref<6x70xi32, #tpu.memory_space<smem>>) -> (i32, i32) {
    %c0_i32 = arith.constant 0 : i32
    %c0_i32_0 = arith.constant 0 : i32
    %c0_i32_1 = arith.constant 0 : i32
    return %c0_i32, %c0_i32_0 : i32, i32
  }
  func.func @transform_2(%arg0: i32, %arg1: memref<6x4xi32, #tpu.memory_space<smem>>, %arg2: memref<6x71xi32, #tpu.memory_space<smem>>, %arg3: memref<6x70xi32, #tpu.memory_space<smem>>, %arg4: memref<6x70xi32, #tpu.memory_space<smem>>) -> (i32, i32, i32) {
    %c0_i32 = arith.constant 0 : i32
    %c0_i32_0 = arith.constant 0 : i32
    %c0_i32_1 = arith.constant 0 : i32
    return %arg0, %c0_i32, %c0_i32_0 : i32, i32, i32
  }
}

</mosaic_0001>

<bundles_post_ra>
// kernel: tpu_custom_call.1
= control target key start
LH: loop header
LB: loop body
LE: loop exit
PB: predicated region body
PF: predicated region fallthrough
CT: control target
= control target key end

     0   :  { %s1045_s0 = inlined_call_operand.vmem [shape: s32[6,4], index: 0, kind: input, shape index: {}]   ;;  %s1046_s4 = inlined_call_operand.hbm [shape: f32[64,128], index: 4, kind: input, shape index: {}]   ;;  %s1047_s5 = inlined_call_operand.hbm [shape: f32[6,128], index: 5, kind: input, shape index: {}]   ;;  %s1048_s6 = inlined_call_operand.hbm [shape: f32[6,77,128], index: 6, kind: output, shape index: {}]   ;;  %s1049_s1 = inlined_call_operand.vmem [shape: s32[6,71], index: 1, kind: input, shape index: {}]   ;;  %s1050_s3 = inlined_call_operand.vmem [shape: s32[6,70], index: 3, kind: input, shape index: {}]   ;;  %s1051_s2 = inlined_call_operand.hbm [shape: s32[6,70], index: 2, kind: input, shape index: {}]  }
   0x1   :  { %1062 = sst [smem:[#allocation30_spill]] %s1047_s5  ;;  %s11_s23 = sshll.u32 %s1045_s0, 4  ;;  %s12_s23 = int_to_ptr.vmem [resolvable:$true] %s11_s23 }
   0x2   :  { %1063 = sst [smem:[#allocation31_spill]] %s1048_s6  ;;  %s15_s26 = sshll.u32 %s1049_s1, 4  ;;  %s16_s26 = int_to_ptr.vmem [resolvable:$true] %s15_s26 }
   0x3   :  { %s539_s27 = scalar_lea.vmem %s12_s23, 128  ;;  %p544_p1 = scmp.lt.s32.totalorder %s12_s23, %s12_s23 }
   0x4   :  { %p540_p0 = scmp.ne.s32.totalorder %s12_s23, %s539_s27  ;;  %p545_p2 = scmp.lt.s32.totalorder %s539_s27, %s539_s27 }
   0x6   :  { %p546_p3 = por %p545_p2, %p544_p1 }
   0x8   :  { %p547_p4 = pnand %p546_p3, %p540_p0 }
   0xa   :  { %550 = shalt.err (!%p547_p4)  }
   0xb   :  { %s763_s28 = smov [#allocation5]   ;;  %s551_s29 = scalar_lea.vmem %s16_s26, 128 }
   0xc   :  { %14 = dma.vmem_to_smem %s12_s23, 128, %s763_s28, [#allocation4] }
   0xd   :  { %p552_p5 = scmp.ne.s32.totalorder %s16_s26, %s551_s29  ;;  %p556_p6 = scmp.lt.s32.totalorder %s16_s26, %s16_s26 }
   0xe   :  { %p557_p7 = scmp.lt.s32.totalorder %s551_s29, %s551_s29 }
  0x10   :  { %p558_p8 = por %p557_p7, %p556_p6 }
  0x12   :  { %p559_p9 = pnand %p558_p8, %p552_p5 }
  0x14   :  { %562 = shalt.err (!%p559_p9)  }
  0x15   :  { %s764_s0 = smov [#allocation6]   ;;  %s21_s7 = sshll.u32 %s1050_s3, 4  ;;  %s22_s7 = int_to_ptr.vmem [resolvable:$true] %s21_s7 }
  0x16   :  { %18 = dma.vmem_to_smem %s16_s26, 128, %s764_s0, [#allocation4] }
  0x17   :  { %s765_s8 = smov [#allocation7]   ;;  %s571_s11 = scalar_lea.vmem %s22_s7, 128 }
  0x18   :  { %20 = dma.hbm_to_smem %s1051_s2, 128, %s765_s8, [#allocation4] }
  0x19   :  { %p572_p10 = scmp.ne.s32.totalorder %s22_s7, %s571_s11  ;;  %p576_p11 = scmp.lt.s32.totalorder %s22_s7, %s22_s7 }
  0x1a   :  { %p577_p12 = scmp.lt.s32.totalorder %s571_s11, %s571_s11 }
  0x1c   :  { %p578_p13 = por %p577_p12, %p576_p11 }
  0x1e   :  { %p579_p0 = pnand %p578_p13, %p572_p10 }
  0x20   :  { %582 = shalt.err (!%p579_p0)  }
  0x21   :  { %s766_s12 = smov [#allocation8]  }
  0x22   :  { %24 = dma.vmem_to_smem %s22_s7, 128, %s766_s12, [#allocation4] }
  0x23   :  { %715 = dma.done.wait [#allocation4], 512 }
  0x24   :  { %716 = vsyncadd [#allocation4], 4294966784 }
  0x25   :  { %26 = sfence }
  0x26   :  { %27 = vsyncpa [#allocation10], 0 }
  0x27   :  { %28 = vsyncpa [#allocation11], 0 }
  0x28   :  { %30 = vsyncpa [#allocation11 + $0x1], 0  ;;  %s820_s3 = smov 0   ;;  %s822_s13 = smov 0  }
  0x29   :  { %s824_s2 = smov 0   ;;  %s826_s14 = smov 0  }
  0x2a LB: > { %1064 = sst [smem:[#allocation23_spill]] %s729_s3  ;;  %s841_s15 = sadd.s32 4294967295, %s741_s14   ;;  %s741_s14 = sphi %s826_s14, %s1083_s14   ;;  %s737_s2 = sphi %s824_s2, %s1085_s2   ;;  %s733_s13 = sphi %s822_s13, %s1087_s13   ;;  %s729_s3 = sphi %s820_s3, %s1086_s3  }
  0x2b   : > { %1065 = sst [smem:[#allocation24_spill]] %s737_s2  ;;  %s413_s16 = sadd.s32 4294967294, %s741_s14  }
  0x2c   : > { %1066 = sst [smem:[#allocation25_spill]] %s741_s14  ;;  %s845_s17 = sadd.s32 1, %s741_s14  }
  0x2d   : > { %1067 = sst [smem:[#allocation26_spill]] %s845_s17  ;;  %s64_s18 = sadd.s32 1, %s737_s2 }
  0x2e   : > { %s61_s19 = ssub.s32 %s741_s14, %s845_s17  ;;  %p74_p1 = scmp.ne.s32.totalorder %s737_s2, %s733_s13 }
  0x2f   : > { %p62_p2 = scmp.eq.s32.totalorder %s61_s19, 0  ;;  %p75_p3 = scmp.eq.s32.totalorder %s841_s15, 2 }
  0x30   : > { %p80_p4 = scmp.ne.s32.totalorder %s733_s13, %s729_s3  ;;  %p81_p5 = scmp.eq.s32.totalorder %s413_s16, 2 }
  0x31   : > { %s856_s20 = scalar_select %p62_p2, %s737_s2, %s64_s18  }
  0x32   : > { %p858_p6 = por %p75_p3, %p74_p1  ;;  %p862_p7 = por %p81_p5, %p80_p4 }
  0x33   : > { %1068 = sst [smem:[#allocation27_spill]] %s856_s20  ;;  %p414_p8 = scmp.ge.s32.totalorder %s741_s14, 1 }
  0x34   : > { %s1070_s22 = scalar_select %p862_p7, 1, 0 }
  0x35   : > { %p88_p9 = scmp.lt.s32.totalorder %s741_s14, 4  ;;  %p457_p10 = scmp.eq.s32.totalorder %s841_s15, 0 }
  0x36   : > { %1071 = sst [smem:[#allocation28_spill]] %s1070_s22  ;;  %s767_s24 = smov [#allocation9]  }
  0x37   : > { %p869_p11 = pnand %p414_p8, %p88_p9  ;;  %s101_s25 = sshll.u32 %s767_s24, 4  ;;  %s102_s25 = int_to_ptr.vmem [resolvable:$true] %s101_s25 }
  0x38   : > { %s594_s26 = scalar_lea.vmem %s102_s25, 128  ;;  %p602_p4 = scmp.lt.s32.totalorder %s102_s25, %s102_s25 }
  0x39   : > { %p449_p12 = pneg %p869_p11  ;;  %p595_p1 = scmp.ne.s32.totalorder %s102_s25, %s594_s26 }
  0x3a   : > { %p603_p5 = scmp.lt.s32.totalorder %s594_s26, %s594_s26 }
  0x3b   : > { %p450_p13 = pnand %p457_p10, %p449_p12 }
  0x3c   : > { %p604_p7 = por %p603_p5, %p602_p4 }
  0x3d   : > { %p585_p0 = pneg %p450_p13 }
  0x3f   : > { %p597_p2 = pnand %p595_p1, %p585_p0 }
  0x41   : > { %p598_p3 = pneg %p597_p2 }
  0x43   : > { %p605_p8 = pnand %p604_p7, %p598_p3 }
  0x45   : > { %608 = shalt.err (!%p605_p8)
}
  0x46   : > { %s1073_s5 = sld [smem:[#allocation30_spill]] }
  0x48   : > { %114 = sbr.rel (%p869_p11) target bundleno = 274 (0x112), region = 24 }
  0x4c   : > { %452 = dma.hbm_to_vmem [thread:$0]  (!%p450_p13), %s1073_s5, 128, %s102_s25, [#allocation10]  }
  0x4d   : > { %718 = dma.done.wait (%p457_p10), [#allocation10], 128  }
  0x4e   : > { %720 = vsyncadd (%p457_p10), [#allocation10], 4294967168  ;;  %s440_s29 = sshll.u32 %s841_s15, 8  ;;  %s1052_s0 = sand.u32 1, %s733_s13  }
  0x4f   : > { %s888_s1 = sld [smem:[#allocation5 + %s440_s29]]  ;;  %s441_s30 = smul.u32 160, %s1052_s0 }
  0x50   : > { %s893_s7 = sshll.u32 %s841_s15, 1 }
  0x51   : > { %1074 = sst [smem:[#allocation29_spill]] %s893_s7  ;;  %s895_s8 = scalar_lea.vmem [#allocation12], %s441_s30 }
  0x55   : > { %p420_p7 = scmp.le.s32.totalorder %s888_s1, 0 }
  0x56   : > { %s898_s9 = smov (!%p420_p7), 0  }
  0x57   : > { %366 = sbr.rel (%p420_p7) target bundleno = 131 (0x83), region = 114 }
  0x5c LB: >> { %s139_s10 = sshra.s32 %s745_s9, 7  ;;  %s144_s11 = sand.u32 127, %s745_s9  ;;  %s745_s9 = sphi %s898_s9, %s136_s9  }
  0x5d   : >> { %s141_s12 = sadd.s32 %s893_s7, %s139_s10  ;;  %s149_s23 = scalar_lea.vmem [#allocation2], %s745_s9 }
  0x5e   : >> { %s421_s16 = sshll.u32 %s141_s12, 7  ;;  %s157_s24 = sshll.u32 %s149_s23, 4  ;;  %s158_s24 = int_to_ptr.vmem [resolvable:$true] %s157_s24 }
  0x5f   : >> { %s145_s18 = sadd.s32 %s421_s16, %s144_s11  ;;  %s611_s5 = scalar_lea.hbm %s1046_s4, 1024 }
  0x60   : >> { %s146_s19 = sld [smem:[#allocation6 + %s145_s18]] }
  0x66   : >> { %s422_s25 = sshll.u32 %s146_s19, 4 }
  0x67   : >> { %s148_s28 = scalar_lea.hbm %s1046_s4, %s422_s25 }
  0x68   : >> { %s609_s29 = scalar_lea.hbm %s148_s28, 16  ;;  %p612_p10 = scmp.lt.s32.totalorder %s148_s28, %s1046_s4 }
  0x69   : >> { %p610_p9 = scmp.ne.s32.totalorder %s148_s28, %s609_s29  ;;  %p613_p11 = scmp.lt.s32.totalorder %s611_s5, %s609_s29 }
  0x6b   : >> { %p614_p12 = por %p613_p11, %p612_p10 }
  0x6d   : >> { %p615_p13 = pnand %p614_p12, %p610_p9 }
  0x6f   : >> { %618 = shalt.err (!%p615_p13)  }
  0x70   : >> { %s619_s10 = scalar_lea.vmem %s158_s24, 16  ;;  %s768_s11 = smov [#allocation2]  }
  0x71   : >> { %p620_p0 = scmp.ne.s32.totalorder %s158_s24, %s619_s10  ;;  %s621_s12 = sshll.u32 %s768_s11, 4  ;;  %s622_s12 = int_to_ptr.vmem [resolvable:$false] %s621_s12 }
  0x72   : >> { %s623_s16 = scalar_lea.vmem %s622_s12, 2304  ;;  %p624_p1 = scmp.lt.s32.totalorder %s158_s24, %s622_s12 }
  0x73   : >> { %p625_p2 = scmp.lt.s32.totalorder %s623_s16, %s619_s10 }
  0x75   : >> { %p626_p3 = por %p625_p2, %p624_p1 }
  0x77   : >> { %p627_p4 = pnand %p626_p3, %p620_p0 }
  0x79   : >> { %630 = shalt.err (!%p627_p4)  }
  0x7a   : >> { %160 = dma.hbm_to_vmem [thread:$0]  %s148_s28, 16, %s158_s24, [#allocation3] }
  0x7b   : >> { %s136_s9 = sadd.s32 1, %s745_s9  }
  0x7c   : >> { %p135_p5 = scmp.ge.s32.totalorder %s136_s9, %s888_s1 }
  0x7e   : > { %138 = sbr.rel (!%p135_p5) target bundleno = 92 (0x5c), region = 120 }
  0x83 PF: > { %v161_v0 = vld [vmem:[#allocation9] sm:$0x3f]  ;;  %s922_s5 = smov 0  }
  0x84   : > { %162 = vst [vmem:[%s895_s8 + $0x1] sm:$0x3f] %v161_v0  ;;  %163 = vst [vmem:[%s895_s8 + $0x51] sm:$0x3f] %v161_v0 }
  0x85 LB: >> { %s1075_s7 = sld [smem:[#allocation29_spill]]  ;;  %s932_s20 = sadd.s32 1, %s749_s5   ;;  %s749_s5 = sphi %s922_s5, %s1076_s5  }
  0x86   : >> { %p423_p8 = scmp.ge.s32.totalorder %s932_s20, 2 }
  0x88   : >> { %175 = sbr.rel (%p423_p8) target bundleno = 193 (0xc1), region = 50 }
  0x8b   : >> { %s929_s2 = sadd.s32 %s749_s5, %s1075_s7  ;;  %s939_s0 = sadd.s32 (!%p423_p8), %s1075_s7, %s932_s20 }
  0x8c   : >> { %s424_s1 = sshll.u32 (!%p423_p8), %s939_s0, 7 }
  0x8d   : >> { %s942_s9 = sld [smem:[#allocation5 + %s424_s1]] }
  0x93   : >> { %p425_p7 = scmp.le.s32.totalorder %s942_s9, 0 }
  0x94   : >> { %s945_s18 = smov (!%p425_p7), 0  }
  0x95   : >> { %371 = sbr.rel (%p425_p7) target bundleno = 193 (0xc1), region = 125 }
  0x9a LB: >>> { %s335_s19 = smul.u32 72, %s749_s5  ;;  %s185_s23 = sshra.s32 %s753_s18, 7  ;;  %s753_s18 = sphi %s945_s18, %s182_s18  }
  0x9b   : >>> { %s190_s24 = sand.u32 127, %s753_s18  ;;  %s187_s25 = sadd.s32 %s185_s23, %s939_s0 }
  0x9c   : >>> { %s336_s26 = sadd.s32 %s753_s18, %s335_s19  ;;  %s426_s27 = sshll.u32 %s187_s25, 7 }
  0x9d   : >>> { %s191_s28 = sadd.s32 %s426_s27, %s190_s24  ;;  %s337_s29 = scalar_lea.vmem [#allocation2], %s336_s26 }
  0x9e   : >>> { %s338_s30 = scalar_lea.vmem %s337_s29, 72 [#allocation2]  ;;  %s192_s10 = sld [smem:[#allocation6 + %s191_s28]] }
  0x9f   : >>> { %s206_s11 = sshll.u32 %s338_s30, 4  ;;  %s339_s12 = scalar_lea.sflag [#allocation3], %s749_s5  ;;  %s207_s11 = int_to_ptr.vmem [resolvable:$true] %s206_s11 }
  0xa0   : >>> { %s340_s16 = scalar_lea.sflag %s339_s12, 1 [#allocation3]  ;;  %s633_s19 = scalar_lea.hbm %s1046_s4, 1024 }
  0xa4   : >>> { %s427_s1 = sshll.u32 %s192_s10, 4 }
  0xa5   : >>> { %s194_s22 = scalar_lea.hbm %s1046_s4, %s427_s1 }
  0xa6   : >>> { %s631_s3 = scalar_lea.hbm %s194_s22, 16  ;;  %p634_p10 = scmp.lt.s32.totalorder %s194_s22, %s1046_s4 }
  0xa7   : >>> { %p632_p9 = scmp.ne.s32.totalorder %s194_s22, %s631_s3  ;;  %p635_p11 = scmp.lt.s32.totalorder %s633_s19, %s631_s3 }
  0xa9   : >>> { %p636_p12 = por %p635_p11, %p634_p10 }
  0xab   : >>> { %p637_p13 = pnand %p636_p12, %p632_p9 }
  0xad   : >>> { %640 = shalt.err (!%p637_p13)  }
  0xae   : >>> { %s641_s25 = scalar_lea.vmem %s207_s11, 16  ;;  %s769_s26 = smov [#allocation2]  }
  0xaf   : >>> { %p642_p0 = scmp.ne.s32.totalorder %s207_s11, %s641_s25  ;;  %s643_s27 = sshll.u32 %s769_s26, 4  ;;  %s644_s27 = int_to_ptr.vmem [resolvable:$false] %s643_s27 }
  0xb0   : >>> { %s645_s17 = scalar_lea.vmem %s644_s27, 2304  ;;  %p646_p1 = scmp.lt.s32.totalorder %s207_s11, %s644_s27 }
  0xb1   : >>> { %p647_p2 = scmp.lt.s32.totalorder %s645_s17, %s641_s25 }
  0xb3   : >>> { %p648_p3 = por %p647_p2, %p646_p1 }
  0xb5   : >>> { %p649_p4 = pnand %p648_p3, %p642_p0 }
  0xb7   : >>> { %652 = shalt.err (!%p649_p4)  }
  0xb8   : >>> { %209 = dma.hbm_to_vmem [thread:$0]  %s194_s22, 16, %s207_s11, %s340_s16 }
  0xb9   : >>> { %s182_s18 = sadd.s32 1, %s753_s18  }
  0xba   : >>> { %p181_p5 = scmp.ge.s32.totalorder %s182_s18, %s942_s9 }
  0xbc   : >> { %184 = sbr.rel (!%p181_p5) target bundleno = 154 (0x9a), region = 131 }
  0xc1 PF: >> { %s428_s6 = sshll.u32 %s929_s2, 7 }
  0xc2   : >> { %s211_s3 = sld [smem:[#allocation5 + %s428_s6]] }
  0xc8   : >> { %p429_p7 = scmp.le.s32.totalorder %s211_s3, 0 }
  0xc9   : >> { %s755_s14 = smov (!%p429_p7), 0  }
  0xca   : >> { %376 = sbr.rel (%p429_p7) target bundleno = 217 (0xd9), region = 136 }
  0xcf LB: >>> { %s218_s22 = scalar_lea.sflag [#allocation3], %s749_s5  ;;  %s757_s14 = sphi %s755_s14, %s215_s14  }
  0xd0   : >>> { %721 = dma.done.wait %s218_s22, 16 }
  0xd1   : >>> { %722 = vsyncadd %s218_s22, 4294967280  ;;  %s215_s14 = sadd.s32 1, %s757_s14  }
  0xd2   : >>> { %p214_p9 = scmp.ge.s32.totalorder %s215_s14, %s211_s3 }
  0xd4   : >> { %217 = sbr.rel (!%p214_p9) target bundleno = 207 (0xcf), region = 142 }
  0xd9 PF: >> { %s222_s7 = sadd.s32 1, %s428_s6  ;;  %s972_s9 = smul.u32 72, %s749_s5 }
  0xda   : >> { %s223_s0 = sld [smem:[#allocation5 + %s222_s7]]  ;;  %s231_s18 = sadd.s32 2, %s428_s6 }
  0xdb   : >> { %s249_s28 = sadd.s32 3, %s428_s6  ;;  %s228_s29 = smul.u32 80, %s749_s5 }
  0xdc   : >> { %s232_s30 = sld [smem:[#allocation5 + %s231_s18]] }
  0xdd   : >> { %s975_s10 = sld [smem:[#allocation5 + %s249_s28]]  ;;  %s229_s12 = scalar_lea.vmem %s895_s8, %s228_s29 [#allocation12] }
  0xe0   : >> { %s225_s11 = sadd.s32 %s972_s9, %s223_s0 }
  0xe1   : >> { %s226_s16 = scalar_lea.vmem [#allocation2], %s225_s11 }
  0xe2   : >> { %v227_v1 = vld [vmem:[%s226_s16] sm:$0x1]  ;;  %s233_s1 = sadd.s32 %s232_s30, %s972_s9 }
  0xe3   : >> { %230 = vst [vmem:[%s229_s12] sm:$0x1] %v227_v1  ;;  %s234_s19 = scalar_lea.vmem [#allocation2], %s233_s1  ;;  %p431_p10 = scmp.le.s32.totalorder %s975_s10, 0 }
  0xe4   : >> { %v430_v2 = vld [vmem:[%s234_s19] ss:$0 sm:$0xff]  ;;  %s759_s23 = smov (!%p431_p10), 0  }
  0xe5   : >> { %240 = vst [vmem:[%s229_s12 + $0x7] sm:$0xff] %v430_v2  ;;  %241 = vst [vmem:[%s229_s12 + $0xf] sm:$0xff] %v430_v2  ;;  %381 = sbr.rel (%p431_p10) target bundleno = 248 (0xf8), region = 147 }
  0xe6   : >> { %242 = vst [vmem:[%s229_s12 + $0x17] sm:$0xff] %v430_v2  ;;  %243 = vst [vmem:[%s229_s12 + $0x1f] sm:$0xff] %v430_v2 }
  0xe7   : >> { %244 = vst [vmem:[%s229_s12 + $0x27] sm:$0xff] %v430_v2  ;;  %245 = vst [vmem:[%s229_s12 + $0x2f] sm:$0xff] %v430_v2 }
  0xe8   : >> { %246 = vst [vmem:[%s229_s12 + $0x37] sm:$0xff] %v430_v2  ;;  %247 = vst [vmem:[%s229_s12 + $0x3f] sm:$0xff] %v430_v2 }
  0xe9   : >> { %248 = vst [vmem:[%s229_s12 + $0x47] sm:$0x3f] %v430_v2 }
  0xea LB: >>> { %s257_s24 = sshra.s32 %s761_s23, 7  ;;  %s262_s25 = sand.u32 127, %s761_s23  ;;  %s761_s23 = sphi %s759_s23, %s254_s23  }
  0xeb   : >>> { %s259_s26 = sadd.s32 %s257_s24, %s929_s2  ;;  %s254_s23 = sadd.s32 1, %s761_s23  }
  0xec   : >>> { %s432_s27 = sshll.u32 %s259_s26, 7  ;;  %p253_p11 = scmp.ge.s32.totalorder %s254_s23, %s975_s10 }
  0xed   : >>> { %s263_s17 = sadd.s32 %s432_s27, %s262_s25 }
  0xee   : >>> { %s264_s6 = sld [smem:[#allocation8 + %s263_s17]] }
  0xef   : >>> { %s268_s3 = sld [smem:[#allocation7 + %s263_s17]] }
  0xf3   : >> { %256 = sbr.rel (!%p253_p11) target bundleno = 234 (0xea), region = 153 }
  0xf4   : >>> { %s265_s14 = sadd.s32 %s264_s6, %s972_s9 }
  0xf5   : >>> { %s269_s22 = sadd.s32 %s268_s3, %s228_s29  ;;  %s266_s7 = scalar_lea.vmem [#allocation2], %s265_s14 }
  0xf6   : >>> { %v267_v3 = vld [vmem:[%s266_s7] sm:$0x1]  ;;  %s270_s0 = scalar_lea.vmem %s895_s8, %s269_s22 [#allocation12] }
  0xf7   : >>> { %271 = vst [vmem:[%s270_s0] sm:$0x1] %v267_v3 }
  0xf8 PF: >> { %s1076_s5 = smov %s932_s20  ;;  %168 = sbr.rel (!%p423_p8) target bundleno = 133 (0x85), region = 164 }
  0xf9   : > { %s442_s18 = smul.u32 (%p423_p8), 2560, %s841_s15  ;;  %s287_s28 = sshll.u32 (%p423_p8), %s895_s8, 4  ;;  %s1001_s28 = int_to_ptr.vmem [resolvable:$true] %s287_s28 }
  0xfa   : > { %s1077_s12 = sld [smem:[#allocation31_spill]] (%p423_p8)  ;;  %s1078_s5 = sand.u32 (%p423_p8), 1, %s733_s13  }
  0xfb   : > { %s1005_s2 = scalar_lea.sflag (%p423_p8), [#allocation11], %s1078_s5  ;;  %s653_s20 = scalar_lea.vmem (%p423_p8), %s1001_s28, 2560 }
  0xfc   : > { %p654_p8 = scmp.ne.s32.totalorder (%p423_p8), %s1001_s28, %s653_s20  ;;  %s770_s15 = smov (%p423_p8), [#allocation12]  }
  0xfd   : > { %s657_s8 = sshll.u32 %s770_s15, 4  ;;  %s658_s8 = int_to_ptr.vmem [resolvable:$false] %s657_s8 }
  0xfe   : > { %p655_p12 = pnand %p654_p8, %p858_p6  ;;  %s659_s9 = scalar_lea.vmem %s658_s8, 5120 }
  0xff   : > { %p660_p0 = scmp.lt.s32.totalorder %s1001_s28, %s658_s8  ;;  %p661_p1 = scmp.lt.s32.totalorder %s659_s9, %s653_s20 }
 0x100   : > { %s999_s16 = scalar_lea.hbm %s1077_s12, %s442_s18  ;;  %p656_p13 = pneg %p655_p12 }
 0x101   : > { %p662_p2 = por %p661_p1, %p660_p0 }
 0x103   : > { %p663_p3 = pnand %p662_p2, %p656_p13 }
 0x105   : > { %666 = shalt.err (!%p663_p3)
}
 0x106   : > { %s667_s29 = scalar_lea.hbm %s999_s16, 2560  ;;  %s671_s19 = scalar_lea.hbm %s1077_s12, 7680 }
 0x107   : > { %p668_p4 = scmp.ne.s32.totalorder %s999_s16, %s667_s29  ;;  %p672_p9 = scmp.lt.s32.totalorder %s999_s16, %s1077_s12 }
 0x108   : > { %p673_p10 = scmp.lt.s32.totalorder %s671_s19, %s667_s29 }
 0x109   : > { %p669_p5 = pnand %p668_p4, %p858_p6 }
 0x10a   : > { %p674_p11 = por %p673_p10, %p672_p9 }
 0x10b   : > { %p670_p7 = pneg %p669_p5 }
 0x10d   : > { %p675_p8 = pnand %p674_p11, %p670_p7 }
 0x10f   : > { %678 = shalt.err (!%p675_p8)
}
 0x110   : > { %s771_s25 = smov 128   ;;  %s772_s26 = smov 8  }
 0x111   : > { %447 = dma.vmem_to_hbm [thread:$0]  (%p858_p6), %s1001_s28, 2560, %s999_s16, %s1005_s2, %s771_s25, %s771_s25, %s772_s26  }
 0x112 PF: > { %s1079_s27 = sld [smem:[#allocation25_spill]] }
 0x113   : > { %s1080_s17 = sld [smem:[#allocation23_spill]] }
 0x114   : > { %s1081_s6 = sld [smem:[#allocation28_spill]] }
 0x118   : > { %p459_p12 = scmp.ge.s32.totalorder %s1079_s27, 2 }
 0x119   : > { %s302_s3 = sand.u32 1, %s1080_s17  }
 0x11a   : > { %p1082_p13 = scmp.ne.s32.totalorder %s1081_s6, 0  ;;  %s303_s14 = scalar_lea.sflag [#allocation11], %s302_s3 }
 0x11c   : > { %p454_p0 = pnand %p459_p12, %p1082_p13 }
 0x11e   : > { %p455_p1 = pneg %p454_p0 }
 0x120   : > { %724 = dma.done.wait (%p455_p1), %s303_s14, 2560  }
 0x121   : > { %726 = vsyncadd (%p455_p1), %s303_s14, 4294964736  ;;  %s1083_s14 = sld [smem:[#allocation26_spill]]  ;;  %s1086_s3 = smov %s733_s13 }
 0x122   : > { %s1084_s22 = sld [smem:[#allocation24_spill]] }
 0x123   : > { %s1085_s2 = sld [smem:[#allocation27_spill]] }
 0x127   : > { %p33_p2 = scmp.ge.s32.totalorder %s1083_s14, 5  }
 0x128   : > { %s1087_s13 = smov %s1084_s22 }
 0x129   :  { %35 = sbr.rel (!%p33_p2) target bundleno = 42 (0x2a), region = 175 }
 0x12e   :  { %308 = vsyncpa [#allocation10], 1 }
 0x12f   :  { %310 = vsyncpa [#allocation10 + $0x1], 1 }
 0x130   :  { %311 = vsyncpa [#allocation11], 1 }
 0x131   :  { %313 = vsyncpa [#allocation11 + $0x1], 1 }
 0x132   :  { %314 = vsyncmov [#allocation3] }
 0x135   :  { %s315_s21 = vpop.sfrf %314 }
 0x136   :  { %p438_p6 = scmp.ne.s32.totalorder %s315_s21, 0 }
 0x138   :  { %319 = shalt.err (%p438_p6)  }
 0x139   :  { %321 = vsyncmov [#allocation3 + $0x1] }
 0x13c   :  { %s322_s7 = vpop.sfrf %321 }
 0x13d   :  { %p439_p3 = scmp.ne.s32.totalorder %s322_s7, 0 }
 0x13f   :  { %326 = shalt.err (%p439_p3)  }

</bundles_post_ra>
